<compile_context>
chip_gen: v7x
topology: tpu7x:2x2x1
jax: 0.10.0
libtpu: 0.0.40
codegen_flags: <defaults>
</compile_context>

<pallas_src>
import functools

import jax
import jax.numpy as jnp
from jax import lax
from jax.experimental import pallas as pl
from jax.experimental.pallas import tpu as pltpu


LN_EPS = 1e-5       # torch.nn.LayerNorm default eps (BN wrapper in the module)
NORM_EPS = 1e-12    # GNormSE3 clamp_min eps

_VMEM_BLOCK_BUDGET = 8 * 1024 * 1024   # bytes for the 4 double-buffered in/out blocks


def _round_up(x, m):
    return ((x + m - 1) // m) * m


def _pick_tile_n(n, ktot, c, itemsize, tile_n):
    """Node (lane-axis) tile: as large as the VMEM budget allows, multiple of 128,
    and >= 2 grid steps when N is large enough (v7x has 2 TensorCores)."""
    if n <= 128:
        return n                                    # single full-extent block
    cp = _round_up(c, 8)                            # sublane padding inside VMEM
    per_col = 4 * ktot * cp * itemsize              # 2 in + 2 out buffers per node col
    tn = min(tile_n, max(128, _VMEM_BLOCK_BUDGET // per_col))
    tn = max(128, (tn // 128) * 128)
    if tn >= n:                                     # avoid a length-1 parallel grid
        tn = max(128, ((n // 2) // 128) * 128)
    return tn


def _gnorm_kernel(v_ref, g_ref, b_ref, o_ref, *, ks, eps, ln_eps):
    # v_ref / o_ref : [Ktot, C, TN]  (components x channels(sublanes) x nodes(lanes))
    # g_ref / b_ref : [n_types, C, 1]  float32 LayerNorm affine params
    off = 0
    for t, k in enumerate(ks):                      # static loop over feature types
        vt = v_ref[off:off + k, :, :].astype(jnp.float32)          # [k, C, TN]

        # per-(channel, node) squared L2 norm over the k components (tiny VPU adds)
        sq = jnp.sum(vt * vt, axis=0)                              # [C, TN]
        # fused clamp + sqrt + reciprocal: one rsqrt on the EUP
        inv_norm = lax.rsqrt(jnp.maximum(sq, eps * eps))           # 1 / clamp(||v||, eps)
        norm = sq * inv_norm                                       # clamp(||v||, eps)

        # LayerNorm over the channel (sublane) axis — exact extent, no masking needed
        c = norm.shape[0]
        inv_c = 1.0 / float(c)
        mean = jnp.sum(norm, axis=0, keepdims=True) * inv_c        # [1, TN]
        centered = norm - mean
        var = jnp.sum(centered * centered, axis=0, keepdims=True) * inv_c
        ln = centered * lax.rsqrt(var + ln_eps) * g_ref[t] + b_ref[t]
        tval = jnp.maximum(ln, 0.0)                                # ReLU

        scale = tval * inv_norm                                    # fnc(norm) / norm
        o_ref[off:off + k, :, :] = (vt * scale[None, :, :]).astype(o_ref.dtype)
        off += k


def _gnorm_group(v, gammas, betas, ks, *, tile_n=1024):
    """One fused pallas_call for all feature types sharing channel count C.

    v:       [Ktot, C, N]  stacked components, kernel-native layout
    gammas:  [n_types, C, 1] float32
    betas:   [n_types, C, 1] float32
    ks:      tuple of per-type component counts (sum == Ktot)
    """
    ktot, c, n = v.shape
    itemsize = jnp.dtype(v.dtype).itemsize
    tn = _pick_tile_n(n, ktot, c, itemsize, tile_n)
    grid = (pl.cdiv(n, tn),)

    kernel = functools.partial(_gnorm_kernel, ks=tuple(int(k) for k in ks),
                               eps=NORM_EPS, ln_eps=LN_EPS)

    n_types = len(ks)
    cost = pl.CostEstimate(
        flops=int((8 * ktot + 12 * n_types) * c * n),
        transcendentals=int(2 * n_types * c * n),        # two rsqrt passes per type
        bytes_accessed=int(2 * v.size * itemsize + (gammas.size + betas.size) * 4),
    )

    return pl.pallas_call(
        kernel,
        out_shape=jax.ShapeDtypeStruct((ktot, c, n), v.dtype),
        grid=grid,
        in_specs=[
            pl.BlockSpec((ktot, c, tn), lambda i: (0, 0, i)),      # node-tiled input
            pl.BlockSpec((n_types, c, 1), lambda i: (0, 0, 0)),    # gamma (resident)
            pl.BlockSpec((n_types, c, 1), lambda i: (0, 0, 0)),    # beta  (resident)
        ],
        out_specs=pl.BlockSpec((ktot, c, tn), lambda i: (0, 0, i)),
        compiler_params=pltpu.CompilerParams(
            dimension_semantics=("parallel",),     # independent node tiles (2 TCs on v7x)
            vmem_limit_bytes=48 * 1024 * 1024,     # headroom, still < v7x 64 MiB physical
        ),
        cost_estimate=cost,
    )(v, gammas, betas)


def gnorm_se3_native(features, params, *, tile_n=1024):
    """GNormSE3 forward on kernel-native layout: dict key -> [2d+1, C, N].
    Zero relayouts; feature types sharing C are fused into a single pallas_call."""
    groups = {}                                   # C -> list of keys (insertion order)
    for key, v in features.items():
        groups.setdefault(int(v.shape[1]), []).append(key)

    out = {}
    for _, keys in groups.items():
        arrs = [features[key] for key in keys]
        ks = tuple(int(a.shape[0]) for a in arrs)
        v = arrs[0] if len(arrs) == 1 else jnp.concatenate(arrs, axis=0)
        g = jnp.stack([jnp.asarray(params[key][0], jnp.float32) for key in keys])[..., None]
        b = jnp.stack([jnp.asarray(params[key][1], jnp.float32) for key in keys])[..., None]
        o = _gnorm_group(v, g, b, ks, tile_n=tile_n)
        off = 0
        for key, k in zip(keys, ks):
            out[key] = o[off:off + k]
            off += k
    return out


def gnorm_se3(features, params, *, tile_n=1024):
    """Module-layout compatibility wrapper: dict key -> [N, C, 2d+1] in / out.
    Performs exactly one relayout each way; production callers should keep the
    kernel-native [2d+1, C, N] layout across the graph and call gnorm_se3_native."""
    # TODO(synk): the num_layers > 0 transform variant (extra Linear(m, m) layers in
    # the norm-transform net) is not fused; only the default num_layers=0 path is.
    native_in = {k: jnp.transpose(v, (2, 1, 0)) for k, v in features.items()}
    native_out = gnorm_se3_native(native_in, params, tile_n=tile_n)
    return {k: jnp.transpose(native_out[k], (2, 1, 0)) for k in features}


def _ref_gnorm_one_type(v, gamma, beta):
    """Pure-JAX reference matching the PyTorch module semantics ([N, C, 2d+1])."""
    norm = jnp.sqrt(jnp.sum(v * v, axis=-1, keepdims=True))
    norm = jnp.maximum(norm, NORM_EPS)
    phase = v / norm
    x = norm[..., 0]                                     # [N, C]
    mean = jnp.mean(x, axis=-1, keepdims=True)
    var = jnp.mean((x - mean) ** 2, axis=-1, keepdims=True)
    ln = (x - mean) / jnp.sqrt(var + LN_EPS) * gamma + beta
    t = jnp.maximum(ln, 0.0)
    return t[..., None] * phase


if __name__ == "__main__":
    key = jax.random.PRNGKey(0)
    keys = jax.random.split(key, 8)

    C = 4
    # LayerNorm affine params per feature type (f32, randomized so the test is meaningful)
    params = {
        '0': (1.0 + 0.1 * jax.random.normal(keys[4], (C,), jnp.float32),
              0.1 * jax.random.normal(keys[5], (C,), jnp.float32)),
        '1': (1.0 + 0.1 * jax.random.normal(keys[6], (C,), jnp.float32),
              0.1 * jax.random.normal(keys[7], (C,), jnp.float32)),
    }

    # N=16: single full-extent block; N=200: multi-step parallel grid + ragged tail.
    for N in (16, 200):
        features = {
            '0': jax.random.normal(keys[0], (N, C, 1), dtype=jnp.float32),  # degree-0
            '1': jax.random.normal(keys[1], (N, C, 3), dtype=jnp.float32),  # degree-1
        }
        out = gnorm_se3(features, params)
        out = {k: jax.block_until_ready(v) for k, v in out.items()}
        for k, v in features.items():
            ref = _ref_gnorm_one_type(v, *params[k])
            assert out[k].shape == v.shape, f"shape mismatch for type {k}, N={N}"
            assert jnp.allclose(out[k], ref, atol=1e-4, rtol=1e-4), \
                f"value mismatch for type {k}, N={N}"

    print("KERNEL_OK")
</pallas_src>

<mosaic_0001>
module attributes {stable_mosaic.version = 11 : i64} {
  func.func @_gnorm_kernel(%arg0: i32, %arg1: memref<4x4x16xf32, #tpu.memory_space<vmem>>, %arg2: memref<2x4x1xf32, #tpu.memory_space<vmem>>, %arg3: memref<2x4x1xf32, #tpu.memory_space<vmem>>, %arg4: memref<4x4x16xf32, #tpu.memory_space<vmem>>) attributes {dimension_semantics = [#tpu.dimension_semantics<parallel>], iteration_bounds = array<i64: 1>, scalar_prefetch = 0 : i64, scratch_operands = 0 : i64, tpu.core_type = #tpu.core_type<tc>, window_params = [{transform_indices = @transform_0, window_bounds = array<i64: 4, 4, 16>}, {pipeline_mode = #tpu.pipeline_mode<synchronous>, transform_indices = @transform_1, window_bounds = array<i64: 2, 4, 1>}, {pipeline_mode = #tpu.pipeline_mode<synchronous>, transform_indices = @transform_2, window_bounds = array<i64: 2, 4, 1>}, {transform_indices = @transform_3, window_bounds = array<i64: 4, 4, 16>}]} {
    %c0 = arith.constant 0 : index
    %c0_0 = arith.constant 0 : index
    %c0_1 = arith.constant 0 : index
    %0 = vector.load %arg1[%c0, %c0_0, %c0_1] : memref<4x4x16xf32, #tpu.memory_space<vmem>>, vector<1x4x16xf32>
    %1 = arith.mulf %0, %0 : vector<1x4x16xf32>
    %cst = arith.constant dense<0.000000e+00> : vector<4x16xf32>
    %2 = vector.multi_reduction <add>, %1, %cst [0] : vector<1x4x16xf32> to vector<4x16xf32>
    %cst_2 = arith.constant 1.000000e-24 : f32
    %3 = vector.broadcast %cst_2 : f32 to vector<4x16xf32>
    %4 = arith.maximumf %2, %3 : vector<4x16xf32>
    %5 = math.rsqrt %4 : vector<4x16xf32>
    %6 = arith.mulf %2, %5 : vector<4x16xf32>
    %cst_3 = arith.constant dense<0.000000e+00> : vector<16xf32>
    %7 = vector.multi_reduction <add>, %6, %cst_3 [0] : vector<4x16xf32> to vector<16xf32>
    %8 = vector.shape_cast %7 : vector<16xf32> to vector<1x16xf32>
    %cst_4 = arith.constant 2.500000e-01 : f32
    %9 = vector.broadcast %cst_4 : f32 to vector<1x16xf32>
    %10 = arith.mulf %8, %9 : vector<1x16xf32>
    %11 = vector.broadcast %10 : vector<1x16xf32> to vector<4x16xf32>
    %12 = arith.subf %6, %11 : vector<4x16xf32>
    %13 = arith.mulf %12, %12 : vector<4x16xf32>
    %cst_5 = arith.constant dense<0.000000e+00> : vector<16xf32>
    %14 = vector.multi_reduction <add>, %13, %cst_5 [0] : vector<4x16xf32> to vector<16xf32>
    %15 = vector.shape_cast %14 : vector<16xf32> to vector<1x16xf32>
    %cst_6 = arith.constant 2.500000e-01 : f32
    %16 = vector.broadcast %cst_6 : f32 to vector<1x16xf32>
    %17 = arith.mulf %15, %16 : vector<1x16xf32>
    %cst_7 = arith.constant 9.99999974E-6 : f32
    %18 = vector.broadcast %cst_7 : f32 to vector<1x16xf32>
    %19 = arith.addf %17, %18 : vector<1x16xf32>
    %20 = math.rsqrt %19 : vector<1x16xf32>
    %21 = vector.broadcast %20 : vector<1x16xf32> to vector<4x16xf32>
    %22 = arith.mulf %12, %21 : vector<4x16xf32>
    %c0_8 = arith.constant 0 : index
    %c0_9 = arith.constant 0 : index
    %c0_10 = arith.constant 0 : index
    %23 = vector.load %arg2[%c0_8, %c0_9, %c0_10] : memref<2x4x1xf32, #tpu.memory_space<vmem>>, vector<1x4x1xf32>
    %24 = vector.shape_cast %23 : vector<1x4x1xf32> to vector<4x1xf32>
    %25 = vector.broadcast %24 : vector<4x1xf32> to vector<4x16xf32>
    %26 = arith.mulf %22, %25 : vector<4x16xf32>
    %c0_11 = arith.constant 0 : index
    %c0_12 = arith.constant 0 : index
    %c0_13 = arith.constant 0 : index
    %27 = vector.load %arg3[%c0_11, %c0_12, %c0_13] : memref<2x4x1xf32, #tpu.memory_space<vmem>>, vector<1x4x1xf32>
    %28 = vector.shape_cast %27 : vector<1x4x1xf32> to vector<4x1xf32>
    %29 = vector.broadcast %28 : vector<4x1xf32> to vector<4x16xf32>
    %30 = arith.addf %26, %29 : vector<4x16xf32>
    %cst_14 = arith.constant 0.000000e+00 : f32
    %31 = vector.broadcast %cst_14 : f32 to vector<4x16xf32>
    %32 = arith.maximumf %30, %31 : vector<4x16xf32>
    %33 = arith.mulf %32, %5 : vector<4x16xf32>
    %34 = vector.shape_cast %33 : vector<4x16xf32> to vector<1x4x16xf32>
    %35 = arith.mulf %0, %34 : vector<1x4x16xf32>
    %c0_15 = arith.constant 0 : index
    %c0_16 = arith.constant 0 : index
    %c0_17 = arith.constant 0 : index
    %36 = vector.load %arg4[%c0_15, %c0_16, %c0_17] : memref<4x4x16xf32, #tpu.memory_space<vmem>>, vector<1x4x16xf32>
    tpu.vector_store %arg4[%c0_15, %c0_16, %c0_17], %35 {strides = array<i32>} : memref<4x4x16xf32, #tpu.memory_space<vmem>>, vector<1x4x16xf32>,
    %c1 = arith.constant 1 : index
    %c0_18 = arith.constant 0 : index
    %c0_19 = arith.constant 0 : index
    %37 = vector.load %arg1[%c1, %c0_18, %c0_19] : memref<4x4x16xf32, #tpu.memory_space<vmem>>, vector<3x4x16xf32>
    %38 = arith.mulf %37, %37 : vector<3x4x16xf32>
    %cst_20 = arith.constant dense<0.000000e+00> : vector<4x16xf32>
    %39 = vector.multi_reduction <add>, %38, %cst_20 [0] : vector<3x4x16xf32> to vector<4x16xf32>
    %cst_21 = arith.constant 1.000000e-24 : f32
    %40 = vector.broadcast %cst_21 : f32 to vector<4x16xf32>
    %41 = arith.maximumf %39, %40 : vector<4x16xf32>
    %42 = math.rsqrt %41 : vector<4x16xf32>
    %43 = arith.mulf %39, %42 : vector<4x16xf32>
    %cst_22 = arith.constant dense<0.000000e+00> : vector<16xf32>
    %44 = vector.multi_reduction <add>, %43, %cst_22 [0] : vector<4x16xf32> to vector<16xf32>
    %45 = vector.shape_cast %44 : vector<16xf32> to vector<1x16xf32>
    %cst_23 = arith.constant 2.500000e-01 : f32
    %46 = vector.broadcast %cst_23 : f32 to vector<1x16xf32>
    %47 = arith.mulf %45, %46 : vector<1x16xf32>
    %48 = vector.broadcast %47 : vector<1x16xf32> to vector<4x16xf32>
    %49 = arith.subf %43, %48 : vector<4x16xf32>
    %50 = arith.mulf %49, %49 : vector<4x16xf32>
    %cst_24 = arith.constant dense<0.000000e+00> : vector<16xf32>
    %51 = vector.multi_reduction <add>, %50, %cst_24 [0] : vector<4x16xf32> to vector<16xf32>
    %52 = vector.shape_cast %51 : vector<16xf32> to vector<1x16xf32>
    %cst_25 = arith.constant 2.500000e-01 : f32
    %53 = vector.broadcast %cst_25 : f32 to vector<1x16xf32>
    %54 = arith.mulf %52, %53 : vector<1x16xf32>
    %cst_26 = arith.constant 9.99999974E-6 : f32
    %55 = vector.broadcast %cst_26 : f32 to vector<1x16xf32>
    %56 = arith.addf %54, %55 : vector<1x16xf32>
    %57 = math.rsqrt %56 : vector<1x16xf32>
    %58 = vector.broadcast %57 : vector<1x16xf32> to vector<4x16xf32>
    %59 = arith.mulf %49, %58 : vector<4x16xf32>
    %c1_27 = arith.constant 1 : index
    %c0_28 = arith.constant 0 : index
    %c0_29 = arith.constant 0 : index
    %60 = vector.load %arg2[%c1_27, %c0_28, %c0_29] : memref<2x4x1xf32, #tpu.memory_space<vmem>>, vector<1x4x1xf32>
    %61 = vector.shape_cast %60 : vector<1x4x1xf32> to vector<4x1xf32>
    %62 = vector.broadcast %61 : vector<4x1xf32> to vector<4x16xf32>
    %63 = arith.mulf %59, %62 : vector<4x16xf32>
    %c1_30 = arith.constant 1 : index
    %c0_31 = arith.constant 0 : index
    %c0_32 = arith.constant 0 : index
    %64 = vector.load %arg3[%c1_30, %c0_31, %c0_32] : memref<2x4x1xf32, #tpu.memory_space<vmem>>, vector<1x4x1xf32>
    %65 = vector.shape_cast %64 : vector<1x4x1xf32> to vector<4x1xf32>
    %66 = vector.broadcast %65 : vector<4x1xf32> to vector<4x16xf32>
    %67 = arith.addf %63, %66 : vector<4x16xf32>
    %cst_33 = arith.constant 0.000000e+00 : f32
    %68 = vector.broadcast %cst_33 : f32 to vector<4x16xf32>
    %69 = arith.maximumf %67, %68 : vector<4x16xf32>
    %70 = arith.mulf %69, %42 : vector<4x16xf32>
    %71 = vector.shape_cast %70 : vector<4x16xf32> to vector<1x4x16xf32>
    %72 = vector.broadcast %71 : vector<1x4x16xf32> to vector<3x4x16xf32>
    %73 = arith.mulf %37, %72 : vector<3x4x16xf32>
    %c1_34 = arith.constant 1 : index
    %c0_35 = arith.constant 0 : index
    %c0_36 = arith.constant 0 : index
    %74 = vector.load %arg4[%c1_34, %c0_35, %c0_36] : memref<4x4x16xf32, #tpu.memory_space<vmem>>, vector<3x4x16xf32>
    tpu.vector_store %arg4[%c1_34, %c0_35, %c0_36], %73 {strides = array<i32>} : memref<4x4x16xf32, #tpu.memory_space<vmem>>, vector<3x4x16xf32>,
    return
  }
  func.func @transform_0(%arg0: i32) -> (i32, i32, i32) {
    %c0_i32 = arith.constant 0 : i32
    %c0_i32_0 = arith.constant 0 : i32
    %c0_i32_1 = arith.constant 0 : i32
    return %c0_i32, %c0_i32_0, %arg0 : i32, i32, i32
  }
  func.func @transform_1(%arg0: i32) -> (i32, i32, i32) {
    %c0_i32 = arith.constant 0 : i32
    %c0_i32_0 = arith.constant 0 : i32
    %c0_i32_1 = arith.constant 0 : i32
    %c0_i32_2 = arith.constant 0 : i32
    return %c0_i32, %c0_i32_0, %c0_i32_1 : i32, i32, i32
  }
  func.func @transform_2(%arg0: i32) -> (i32, i32, i32) {
    %c0_i32 = arith.constant 0 : i32
    %c0_i32_0 = arith.constant 0 : i32
    %c0_i32_1 = arith.constant 0 : i32
    %c0_i32_2 = arith.constant 0 : i32
    return %c0_i32, %c0_i32_0, %c0_i32_1 : i32, i32, i32
  }
  func.func @transform_3(%arg0: i32) -> (i32, i32, i32) {
    %c0_i32 = arith.constant 0 : i32
    %c0_i32_0 = arith.constant 0 : i32
    %c0_i32_1 = arith.constant 0 : i32
    return %c0_i32, %c0_i32_0, %arg0 : i32, i32, i32
  }
}

</mosaic_0001>

<bundles_post_ra>
// kernel: tpu_custom_call.1
= control target key start
LH: loop header
LB: loop body
LE: loop exit
PB: predicated region body
PF: predicated region fallthrough
CT: control target
= control target key end

     0   :  { %v181_v2 = vmov 0   ;;  %s272_s0 = inlined_call_operand.vmem [shape: f32[4,4,16], index: 0, kind: input, shape index: {}]   ;;  %s273_s1 = inlined_call_operand.vmem [shape: f32[2,4,1], index: 1, kind: input, shape index: {}]   ;;  %s274_s2 = inlined_call_operand.vmem [shape: f32[2,4,1], index: 2, kind: input, shape index: {}]   ;;  %s275_s3 = inlined_call_operand.hbm [shape: f32[4,4,16], index: 3, kind: output, shape index: {}]  }
   0x1   :  { %v50_v0 = vld [vmem:[%s274_s2] sm:$0xf]  ;;  %148 = vset.pattern.permute.xlu1 %v181_v2  ;;  %147 = vset.pattern.permute.xlu0 %v181_v2  ;;  %v142_v3 = vld [vmem:[%s274_s2 + $0x4] sm:$0xf] }
   0x2   :  { %v43_v1 = vld [vmem:[%s273_s1] sm:$0xf]  ;;  %53 = vperm.xlu1 %148, %v50_v0   ;;  %v141_v4 = vld [vmem:[%s273_s1 + $0x4] sm:$0xf] }
   0x3   :  { %46 = vperm.xlu0 %147, %v43_v1  }
   0x4   :  { %8 = vsyncpa [#allocation3], 0  ;;  %v220_v5 = vld [vmem:[%s272_s0 + $0x4] sm:$0xf]  ;;  %v225_v6 = vld [vmem:[%s272_s0 + $0x8] sm:$0xf] }
   0x5   :  { %v65_v7 = vmul.f32 %v220_v5, %v220_v5  ;;  %v66_v8 = vmul.f32 %v225_v6, %v225_v6  ;;  %vm21_vm0 = vcmask 125952   ;;  %v234_v9 = vld [vmem:[%s272_s0 + $0xc] sm:$0xf]  ;;  %v239_v10 = vld [vmem:[%s272_s0] sm:$0xf]  ;;  %s182_s0 = smov [#allocation2]  }
   0x6   :  { %109 = vperm.xlu1 %148, %v142_v3   ;;  %v67_v11 = vmul.f32 %v234_v9, %v234_v9  ;;  %v16_v14 = vmul.f32 %v239_v10, %v239_v10  ;;  %s127_s26 = sshll.u32 %s182_s0, 4  ;;  %s128_s26 = int_to_ptr.vmem [resolvable:$true] %s127_s26 }
   0x7   :  { %101 = vperm.xlu0 %147, %v141_v4   ;;  %v68_v12 = vsel %vm21_vm0, %v65_v7, 0.0  ;;  %v69_v13 = vsel %vm21_vm0, %v66_v8, 0.0  ;;  %s157_s27 = scalar_lea.vmem %s128_s26, 256  ;;  %p162_p1 = scmp.lt.s32.totalorder %s128_s26, %s128_s26 }
   0x8   :  { %v70_v15 = vadd.f32 %v69_v13, %v68_v12  ;;  %v71_v16 = vsel %vm21_vm0, %v67_v11, 0.0  ;;  %v18_v17 = vmax.f32 %v16_v14, 1e-24  ;;  %p158_p0 = scmp.ne.s32.totalorder %s128_s26, %s157_s27  ;;  %p163_p2 = scmp.lt.s32.totalorder %s157_s27, %s157_s27 }
   0xa   :  { %v72_v18 = vadd.f32 %v71_v16, %v70_v15  ;;  %149 = vrsqrt.f32 %v18_v17  ;;  %p164_p3 = por %p163_p2, %p162_p1 }
   0xc   :  { %v73_v19 = vmax.f32 %v72_v18, 1e-24  ;;  %p165_p4 = pnand %p164_p3, %p158_p0 }
   0xe   :  { %151 = vrsqrt.f32 %v73_v19 }
  0x14   :  { %v150_v20 = vpop.eup %149 }
  0x15   :  { %v20_v21 = vmul.f32 %v150_v20, %v16_v14 }
  0x17   :  { %v22_v23 = vsel %vm21_vm0, %v20_v21, 0.0 }
  0x18   :  { %v152_v22 = vpop.eup %151  ;;  %v23_v25 = vrot.slane %v22_v23, 4 }
  0x19   :  { %v75_v24 = vmul.f32 %v152_v22, %v72_v18 }
  0x1a   :  { %v24_v27 = vadd.f32 %v23_v25, %v22_v23 }
  0x1b   :  { %v76_v26 = vsel %vm21_vm0, %v75_v24, 0.0 }
  0x1c   :  { %v77_v28 = vrot.slane %v76_v26, 4  ;;  %v25_v29 = vrot.slane %v24_v27, 2 }
  0x1e   :  { %v78_v30 = vadd.f32 %v77_v28, %v76_v26  ;;  %v26_v31 = vadd.f32 %v25_v29, %v24_v27 }
  0x20   :  { %v79_v32 = vrot.slane %v78_v30, 2  ;;  %v27_v33 = vrot.slane %v26_v31, 1 }
  0x22   :  { %v80_v34 = vadd.f32 %v79_v32, %v78_v30  ;;  %v28_v35 = vadd.f32 %v27_v33, %v26_v31 }
  0x24   :  { %v81_v36 = vrot.slane %v80_v34, 1  ;;  %v29_v37 = vmul.f32 0.25, %v28_v35 }
  0x26   :  { %v82_v38 = vadd.f32 %v81_v36, %v80_v34  ;;  %v30_v39 = vsub.f32 %v20_v21, %v29_v37 }
  0x28   :  { %v83_v40 = vmul.f32 0.25, %v82_v38  ;;  %v31_v41 = vmul.f32 %v30_v39, %v30_v39 }
  0x2a   :  { %v84_v42 = vsub.f32 %v75_v24, %v83_v40  ;;  %v32_v43 = vsel %vm21_vm0, %v31_v41, 0.0 }
  0x2b   :  { %v33_v45 = vrot.slane %v32_v43, 4 }
  0x2c   :  { %v85_v44 = vmul.f32 %v84_v42, %v84_v42 }
  0x2d   :  { %v34_v47 = vadd.f32 %v33_v45, %v32_v43 }
  0x2e   :  { %v86_v46 = vsel %vm21_vm0, %v85_v44, 0.0 }
  0x2f   :  { %v87_v48 = vrot.slane %v86_v46, 4  ;;  %v35_v49 = vrot.slane %v34_v47, 2 }
  0x31   :  { %v88_v50 = vadd.f32 %v87_v48, %v86_v46  ;;  %v36_v51 = vadd.f32 %v35_v49, %v34_v47 }
  0x33   :  { %v89_v52 = vrot.slane %v88_v50, 2  ;;  %v37_v53 = vrot.slane %v36_v51, 1 }
  0x35   :  { %v90_v54 = vadd.f32 %v89_v52, %v88_v50  ;;  %v38_v55 = vadd.f32 %v37_v53, %v36_v51 }
  0x37   :  { %v91_v56 = vrot.slane %v90_v54, 1  ;;  %v39_v57 = vmul.f32 0.25, %v38_v55 }
  0x39   :  { %v92_v58 = vadd.f32 %v91_v56, %v90_v54  ;;  %v40_v59 = vadd.f32 1e-05, %v39_v57 }
  0x3b   :  { %v93_v60 = vmul.f32 0.25, %v92_v58  ;;  %153 = vrsqrt.f32 %v40_v59 }
  0x3d   :  { %v94_v61 = vadd.f32 1e-05, %v93_v60 }
  0x3f   :  { %155 = vrsqrt.f32 %v94_v61 }
  0x45   :  { %v154_v62 = vpop.eup %153 }
  0x46   :  { %v42_v63 = vmul.f32 %v154_v62, %v30_v39 }
  0x49   :  { %v156_v0 = vpop.eup %155 }
  0x4a   :  { %v96_v4 = vmul.f32 %v156_v0, %v84_v42 }
  0x81   :  { %v54_v1 = vpop.permute.xlu1 %53 }
  0x82   :  { %v47_v2 = vpop.permute.xlu0 %46 }
  0x83   :  { %v49_v3 = vmul.f32 %v47_v2, %v42_v63 }
  0x85   :  { %v56_v7 = vadd.f32 %v54_v1, %v49_v3  ;;  %v110_v13 = vpop.permute.xlu1 %109 }
  0x86   :  { %v102_v8 = vpop.permute.xlu0 %101 }
  0x87   :  { %v57_v11 = vmax.f32 %v56_v7, 0.0  ;;  %v104_v12 = vmul.f32 %v102_v8, %v96_v4 }
  0x89   :  { %v58_v14 = vmul.f32 %v150_v20, %v57_v11  ;;  %v112_v15 = vadd.f32 %v110_v13, %v104_v12 }
  0x8b   :  { %v59_v16 = vmul.f32 %v58_v14, %v239_v10  ;;  %v113_v17 = vmax.f32 %v112_v15, 0.0 }
  0x8d   :  { %60 = vst.msk [vmem:[#allocation2] sm:$0xf] %vm21_vm0, %v59_v16  ;;  %v114_v18 = vmul.f32 %v152_v22, %v113_v17 }
  0x8f   :  { %v115_v19 = vmul.f32 %v220_v5, %v114_v18  ;;  %v116_v21 = vmul.f32 %v225_v6, %v114_v18  ;;  %v117_v23 = vmul.f32 %v234_v9, %v114_v18 }
  0x91   :  { %119 = vst.msk [vmem:[#allocation2 + $0x4] sm:$0xf] %vm21_vm0, %v115_v19  ;;  %120 = vst.msk [vmem:[#allocation2 + $0x8] sm:$0xf] %vm21_vm0, %v116_v21 }
  0x92   :  { %121 = vst.msk [vmem:[#allocation2 + $0xc] sm:$0xf] %vm21_vm0, %v117_v23 }
  0x93   :  { %168 = shalt.err (!%p165_p4)
}
  0x94   :  { %s169_s30 = scalar_lea.hbm %s275_s3, 256 }
  0x95   :  { %p170_p5 = scmp.ne.s32.totalorder %s275_s3, %s169_s30  ;;  %p173_p6 = scmp.lt.u32.totalorder %s169_s30, %s275_s3 }
  0x97   :  { %p175_p7 = pnand %p173_p6, %p170_p5 }
  0x99   :  { %178 = shalt.err (!%p175_p7)
}
  0x9a   :  { %s183_s8 = smov 64   ;;  %s184_s9 = smov 4  }
  0x9b   :  { %133 = dma.vmem_to_hbm [thread:$0]  %s128_s26, 256, %s275_s3, [#allocation3], %s183_s8, %s183_s8, %s184_s9  }
  0x9c   :  { %179 = dma.done.wait [#allocation3], 256  }
  0x9d   :  { %180 = vsyncadd [#allocation3], 4294967040 }
  0x9e   :  { %137 = vsyncpa [#allocation3], 1 }

</bundles_post_ra>
